<compile_context>
chip_gen: v6e
topology: v6e:2x2x1
jax: 0.10.0
libtpu: 0.0.40
codegen_flags: <defaults>
</compile_context>

<pallas_src>
import numpy as np
import jax
import jax.numpy as jnp
from jax.experimental import pallas as pl
from jax.experimental.pallas import tpu as pltpu


def _pick_tile_co(c_out, max_tile=16):
    """Largest divisor of c_out that is <= max_tile (keeps the grid exact)."""
    t = min(c_out, max_tile)
    while c_out % t:
        t -= 1
    return t


def _make_fused_kernel(shift_list, tile_co, n_taps, hout, wout):
    """Fused AddShift kernel.  Grid = (b, c_out // tile_co).

    Taps and the tile_co channel loop are statically unrolled; channel gather is a
    dynamic leading-axis index into the VMEM-resident pre-offset x slabs.  Each
    branch's tap slice is misaligned on at most one axis (H for vertical, W for
    horizontal) because the extra_pad offset was applied in the wrapper.
    """

    def kernel(c1_ref, c2_ref, xv_ref, xh_ref, out1_ref, out2_ref):
        co_base = pl.program_id(1) * tile_co

        for t in range(tile_co):                      # static unroll over the channel tile
            flat_base = (co_base + t) * n_taps        # scalar (SMEM) index arithmetic

            acc1 = jnp.zeros((hout, wout), jnp.float32)   # vertical branch (flag==1)
            acc2 = jnp.zeros((hout, wout), jnp.float32)   # horizontal branch (flag==0)

            for g, sh in enumerate(shift_list):       # static unroll over taps
                ci1 = c1_ref[flat_base + g]
                acc1 = acc1 + xv_ref[ci1, pl.ds(sh, hout), :].astype(jnp.float32)

                ci2 = c2_ref[flat_base + g]
                acc2 = acc2 + xh_ref[ci2, :, pl.ds(sh, wout)].astype(jnp.float32)

            # Write this channel out immediately -> only 2 live accumulators at a time.
            # TODO(synk): f32 accumulate then cast to x.dtype; confirm against the real
            # AddShift_ops CUDA op's output dtype / accumulation behavior.
            out1_ref[t] = acc1.astype(out1_ref.dtype)
            out2_ref[t] = acc2.astype(out2_ref.dtype)

    return kernel


def fused_add_shift(x, c1_idxes, c2_idxes, shift_pads, extra_pad, hout, wout,
                    max_tile_co=16):
    """One pallas_call producing both AddShift_ops outputs while reading x once/branch."""
    b, c_in, hin, win = x.shape
    c_out, n_taps = c1_idxes.shape
    assert c2_idxes.shape == (c_out, n_taps)

    shift_list = tuple(int(s) for s in shift_pads)
    extra_pad = int(extra_pad)
    assert len(shift_list) == n_taps
    # Shift validity (no runtime bounds check on VMEM refs -> check statically).
    for sh in shift_list:
        assert 0 <= sh and sh + hout <= hin and sh + wout <= win, "shift out of range"
    assert 0 <= extra_pad and extra_pad + hout <= hin and extra_pad + wout <= win

    tile_co = _pick_tile_co(c_out, max_tile_co)
    kernel = _make_fused_kernel(shift_list, tile_co, n_taps, hout, wout)

    # Hoist the constant extra_pad offset out of the per-tap loop (one pre-offset view
    # per branch -> each in-kernel tap slice is misaligned on at most one axis).
    x_v = jax.lax.slice_in_dim(x, extra_pad, extra_pad + wout, axis=3)  # (b, c_in, hin, wout)
    x_h = jax.lax.slice_in_dim(x, extra_pad, extra_pad + hout, axis=2)  # (b, c_in, hout, win)

    # Flattened + clamped channel-index tables for SMEM scalar prefetch.
    c1_flat = jnp.clip(c1_idxes.astype(jnp.int32), 0, c_in - 1).reshape(-1)
    c2_flat = jnp.clip(c2_idxes.astype(jnp.int32), 0, c_in - 1).reshape(-1)

    # VMEM budget: double-buffered x slabs + double-buffered output tiles + headroom,
    # capped per-generation (~85% of physical VMEM; avoids requesting the full 64 MiB
    # of a v7x TensorCore while still using >64 MiB on v5e/v6e when useful).
    itemsize = jnp.dtype(x.dtype).itemsize
    xv_block = c_in * hin * wout * itemsize
    xh_block = c_in * hout * win * itemsize
    o_block = tile_co * hout * wout * itemsize
    needed = 2 * (xv_block + xh_block) + 4 * o_block + (4 << 20)
    try:
        vmem_cap = int(pltpu.get_tpu_info().vmem_capacity_bytes) * 85 // 100
    except Exception:  # pragma: no cover - conservative fallback
        vmem_cap = 48 << 20
    vmem_bytes = int(min(max(needed, 32 << 20), vmem_cap))
    # TODO(synk): if `needed` > vmem_cap (huge images), use the manual H-strip DMA path.

    # Prefer sharding the batch axis across TensorCores when b >= 2 so x is streamed
    # from HBM once per (batch, core); otherwise let the c_out-tile axis parallelize.
    dim_sem = ("parallel", "arbitrary") if b >= 2 else ("arbitrary", "parallel")

    out1, out2 = pl.pallas_call(
        kernel,
        out_shape=(
            jax.ShapeDtypeStruct((b, c_out, hout, wout), x.dtype),
            jax.ShapeDtypeStruct((b, c_out, hout, wout), x.dtype),
        ),
        grid_spec=pltpu.PrefetchScalarGridSpec(
            num_scalar_prefetch=2,  # (c1_flat, c2_flat) -> SMEM, read in-kernel
            grid=(b, c_out // tile_co),
            in_specs=[
                # Full per-batch channel slabs; constant block index across the c_out
                # axis -> resident in VMEM, each read from HBM once per batch element.
                pl.BlockSpec((None, c_in, hin, wout),
                             lambda n, cb, c1, c2: (n, 0, 0, 0)),
                pl.BlockSpec((None, c_in, hout, win),
                             lambda n, cb, c1, c2: (n, 0, 0, 0)),
            ],
            out_specs=(
                pl.BlockSpec((None, tile_co, hout, wout),
                             lambda n, cb, c1, c2: (n, cb, 0, 0)),
                pl.BlockSpec((None, tile_co, hout, wout),
                             lambda n, cb, c1, c2: (n, cb, 0, 0)),
            ),
        ),
        compiler_params=pltpu.CompilerParams(
            dimension_semantics=dim_sem,
            vmem_limit_bytes=vmem_bytes,
        ),
    )(c1_flat, c2_flat, x_v, x_h)

    return out1, out2


class LoraModuleClonePallas:
    """JAX/Pallas mirror of lora_module_clone (no learnable weights; shift_pads is a
    constant buffer supplied at construction time and baked into the kernel)."""

    def __init__(self, pad_lk, shift_pads, small_kernel, c_out, c_in, max_tile_co=16):
        self.c_in = c_in
        self.c_out = c_out
        self.pad_lk = pad_lk
        self.extra_pad = pad_lk - small_kernel // 2
        self.shift_pads = tuple(int(s) for s in np.asarray(shift_pads))
        self.max_tile_co = max_tile_co

    def __call__(self, x, b, hout, wout, c1_idxes, c2_idxes):
        hin, win = hout + self.pad_lk, wout + self.pad_lk
        assert x.shape == (b, self.c_in, hin, win)
        out1, out2 = fused_add_shift(
            x, c1_idxes, c2_idxes, self.shift_pads, self.extra_pad, hout, wout,
            self.max_tile_co,
        )
        return [out1, out2]


def _ref_addshift(x, c_idxes, shift_pads, extra_pad, hout, wout, vertical):
    b = x.shape[0]
    c_out, n_taps = c_idxes.shape
    out = np.zeros((b, c_out, hout, wout), dtype=np.float32)
    for co in range(c_out):
        for g in range(n_taps):
            ci = int(c_idxes[co, g])
            sp = int(shift_pads[g])
            dh, dw = (sp, extra_pad) if vertical else (extra_pad, sp)
            out[:, co] += x[:, ci, dh:dh + hout, dw:dw + wout]
    return out


if __name__ == "__main__":
    # Small deterministic example
    b, c_in, c_out = 2, 8, 4
    hout = wout = 16
    small_kernel = 3
    pad_lk = 3
    shift_pads = [0, 2, 3]          # per-tap shifts, each in [0, pad_lk]
    n_taps = len(shift_pads)
    hin, win = hout + pad_lk, wout + pad_lk

    key = jax.random.PRNGKey(0)
    kx, k1, k2 = jax.random.split(key, 3)
    x = jax.random.normal(kx, (b, c_in, hin, win), dtype=jnp.float32)
    c1_idxes = jax.random.randint(k1, (c_out, n_taps), 0, c_in, dtype=jnp.int32)
    c2_idxes = jax.random.randint(k2, (c_out, n_taps), 0, c_in, dtype=jnp.int32)

    module = LoraModuleClonePallas(pad_lk, shift_pads, small_kernel, c_out, c_in)
    out1, out2 = module(x, b, hout, wout, c1_idxes, c2_idxes)
    jax.block_until_ready((out1, out2))

    # Reference check against the reconstructed AddShift semantics.
    x_np = np.asarray(x)
    sp_np = np.asarray(shift_pads, dtype=np.int32)
    extra_pad = pad_lk - small_kernel // 2
    ref1 = _ref_addshift(x_np, np.asarray(c1_idxes), sp_np, extra_pad, hout, wout, True)
    ref2 = _ref_addshift(x_np, np.asarray(c2_idxes), sp_np, extra_pad, hout, wout, False)
    np.testing.assert_allclose(np.asarray(out1), ref1, rtol=1e-5, atol=1e-5)
    np.testing.assert_allclose(np.asarray(out2), ref2, rtol=1e-5, atol=1e-5)

    print("KERNEL_OK")
</pallas_src>

<mosaic_0001>
module attributes {stable_mosaic.version = 11 : i64} {
  func.func @kernel(%arg0: i32, %arg1: i32, %arg2: memref<12xi32, #tpu.memory_space<smem>>, %arg3: memref<12xi32, #tpu.memory_space<smem>>, %arg4: memref<1x8x19x16xf32, #tpu.memory_space<vmem>>, %arg5: memref<1x8x16x19xf32, #tpu.memory_space<vmem>>, %arg6: memref<1x4x16x16xf32, #tpu.memory_space<vmem>>, %arg7: memref<1x4x16x16xf32, #tpu.memory_space<vmem>>) attributes {dimension_semantics = [#tpu.dimension_semantics<parallel>, #tpu.dimension_semantics<arbitrary>], iteration_bounds = array<i64: 2, 1>, scalar_prefetch = 2 : i64, scratch_operands = 0 : i64, tpu.core_type = #tpu.core_type<tc>, window_params = [{transform_indices = @transform_0, window_bounds = array<i64: 1, 8, 19, 16>}, {transform_indices = @transform_1, window_bounds = array<i64: 1, 8, 16, 19>}, {transform_indices = @transform_2, window_bounds = array<i64: 1, 4, 16, 16>}, {transform_indices = @transform_3, window_bounds = array<i64: 1, 4, 16, 16>}]} {
    %c4_i32 = arith.constant 4 : i32
    %0 = arith.muli %arg1, %c4_i32 : i32
    %c0_i32 = arith.constant 0 : i32
    %1 = arith.addi %0, %c0_i32 : i32
    %c3_i32 = arith.constant 3 : i32
    %2 = arith.muli %1, %c3_i32 : i32
    %cst = arith.constant 0.000000e+00 : f32
    %3 = vector.broadcast %cst : f32 to vector<16x16xf32>
    %cst_0 = arith.constant 0.000000e+00 : f32
    %4 = vector.broadcast %cst_0 : f32 to vector<16x16xf32>
    %c0_i32_1 = arith.constant 0 : i32
    %5 = arith.addi %2, %c0_i32_1 : i32
    %6 = arith.index_cast %5 : i32 to index
    %7 = memref.load %arg2[%6] : memref<12xi32, #tpu.memory_space<smem>>
    %c0 = arith.constant 0 : index
    %8 = arith.index_cast %7 : i32 to index
    %c0_2 = arith.constant 0 : index
    %c0_3 = arith.constant 0 : index
    %9 = vector.load %arg4[%c0, %8, %c0_2, %c0_3] : memref<1x8x19x16xf32, #tpu.memory_space<vmem>>, vector<1x1x16x16xf32>
    %10 = vector.shape_cast %9 : vector<1x1x16x16xf32> to vector<16x16xf32>
    %11 = arith.addf %3, %10 : vector<16x16xf32>
    %c0_i32_4 = arith.constant 0 : i32
    %12 = arith.addi %2, %c0_i32_4 : i32
    %13 = arith.index_cast %12 : i32 to index
    %14 = memref.load %arg3[%13] : memref<12xi32, #tpu.memory_space<smem>>
    %c0_5 = arith.constant 0 : index
    %15 = arith.index_cast %14 : i32 to index
    %c0_6 = arith.constant 0 : index
    %c0_7 = arith.constant 0 : index
    %16 = vector.load %arg5[%c0_5, %15, %c0_6, %c0_7] : memref<1x8x16x19xf32, #tpu.memory_space<vmem>>, vector<1x1x16x16xf32>
    %17 = vector.shape_cast %16 : vector<1x1x16x16xf32> to vector<16x16xf32>
    %18 = arith.addf %4, %17 : vector<16x16xf32>
    %c1_i32 = arith.constant 1 : i32
    %19 = arith.addi %2, %c1_i32 : i32
    %20 = arith.index_cast %19 : i32 to index
    %21 = memref.load %arg2[%20] : memref<12xi32, #tpu.memory_space<smem>>
    %c0_8 = arith.constant 0 : index
    %22 = arith.index_cast %21 : i32 to index
    %c2 = arith.constant 2 : index
    %c0_9 = arith.constant 0 : index
    %23 = vector.load %arg4[%c0_8, %22, %c2, %c0_9] : memref<1x8x19x16xf32, #tpu.memory_space<vmem>>, vector<1x1x16x16xf32>
    %24 = vector.shape_cast %23 : vector<1x1x16x16xf32> to vector<16x16xf32>
    %25 = arith.addf %11, %24 : vector<16x16xf32>
    %c1_i32_10 = arith.constant 1 : i32
    %26 = arith.addi %2, %c1_i32_10 : i32
    %27 = arith.index_cast %26 : i32 to index
    %28 = memref.load %arg3[%27] : memref<12xi32, #tpu.memory_space<smem>>
    %c0_11 = arith.constant 0 : index
    %29 = arith.index_cast %28 : i32 to index
    %c0_12 = arith.constant 0 : index
    %c2_13 = arith.constant 2 : index
    %30 = vector.load %arg5[%c0_11, %29, %c0_12, %c2_13] : memref<1x8x16x19xf32, #tpu.memory_space<vmem>>, vector<1x1x16x16xf32>
    %31 = vector.shape_cast %30 : vector<1x1x16x16xf32> to vector<16x16xf32>
    %32 = arith.addf %18, %31 : vector<16x16xf32>
    %c2_i32 = arith.constant 2 : i32
    %33 = arith.addi %2, %c2_i32 : i32
    %34 = arith.index_cast %33 : i32 to index
    %35 = memref.load %arg2[%34] : memref<12xi32, #tpu.memory_space<smem>>
    %c0_14 = arith.constant 0 : index
    %36 = arith.index_cast %35 : i32 to index
    %c3 = arith.constant 3 : index
    %c0_15 = arith.constant 0 : index
    %37 = vector.load %arg4[%c0_14, %36, %c3, %c0_15] : memref<1x8x19x16xf32, #tpu.memory_space<vmem>>, vector<1x1x16x16xf32>
    %38 = vector.shape_cast %37 : vector<1x1x16x16xf32> to vector<16x16xf32>
    %39 = arith.addf %25, %38 : vector<16x16xf32>
    %c2_i32_16 = arith.constant 2 : i32
    %40 = arith.addi %2, %c2_i32_16 : i32
    %41 = arith.index_cast %40 : i32 to index
    %42 = memref.load %arg3[%41] : memref<12xi32, #tpu.memory_space<smem>>
    %c0_17 = arith.constant 0 : index
    %43 = arith.index_cast %42 : i32 to index
    %c0_18 = arith.constant 0 : index
    %c3_19 = arith.constant 3 : index
    %44 = vector.load %arg5[%c0_17, %43, %c0_18, %c3_19] : memref<1x8x16x19xf32, #tpu.memory_space<vmem>>, vector<1x1x16x16xf32>
    %45 = vector.shape_cast %44 : vector<1x1x16x16xf32> to vector<16x16xf32>
    %46 = arith.addf %32, %45 : vector<16x16xf32>
    %c0_20 = arith.constant 0 : index
    %c0_21 = arith.constant 0 : index
    %c0_22 = arith.constant 0 : index
    %c0_23 = arith.constant 0 : index
    %47 = vector.load %arg6[%c0_20, %c0_21, %c0_22, %c0_23] : memref<1x4x16x16xf32, #tpu.memory_space<vmem>>, vector<1x1x16x16xf32>
    %48 = vector.shape_cast %47 : vector<1x1x16x16xf32> to vector<16x16xf32>
    %49 = vector.shape_cast %39 : vector<16x16xf32> to vector<1x1x16x16xf32>
    tpu.vector_store %arg6[%c0_20, %c0_21, %c0_22, %c0_23], %49 {strides = array<i32>} : memref<1x4x16x16xf32, #tpu.memory_space<vmem>>, vector<1x1x16x16xf32>,
    %c0_24 = arith.constant 0 : index
    %c0_25 = arith.constant 0 : index
    %c0_26 = arith.constant 0 : index
    %c0_27 = arith.constant 0 : index
    %50 = vector.load %arg7[%c0_24, %c0_25, %c0_26, %c0_27] : memref<1x4x16x16xf32, #tpu.memory_space<vmem>>, vector<1x1x16x16xf32>
    %51 = vector.shape_cast %50 : vector<1x1x16x16xf32> to vector<16x16xf32>
    %52 = vector.shape_cast %46 : vector<16x16xf32> to vector<1x1x16x16xf32>
    tpu.vector_store %arg7[%c0_24, %c0_25, %c0_26, %c0_27], %52 {strides = array<i32>} : memref<1x4x16x16xf32, #tpu.memory_space<vmem>>, vector<1x1x16x16xf32>,
    %c1_i32_28 = arith.constant 1 : i32
    %53 = arith.addi %0, %c1_i32_28 : i32
    %c3_i32_29 = arith.constant 3 : i32
    %54 = arith.muli %53, %c3_i32_29 : i32
    %cst_30 = arith.constant 0.000000e+00 : f32
    %55 = vector.broadcast %cst_30 : f32 to vector<16x16xf32>
    %cst_31 = arith.constant 0.000000e+00 : f32
    %56 = vector.broadcast %cst_31 : f32 to vector<16x16xf32>
    %c0_i32_32 = arith.constant 0 : i32
    %57 = arith.addi %54, %c0_i32_32 : i32
    %58 = arith.index_cast %57 : i32 to index
    %59 = memref.load %arg2[%58] : memref<12xi32, #tpu.memory_space<smem>>
    %c0_33 = arith.constant 0 : index
    %60 = arith.index_cast %59 : i32 to index
    %c0_34 = arith.constant 0 : index
    %c0_35 = arith.constant 0 : index
    %61 = vector.load %arg4[%c0_33, %60, %c0_34, %c0_35] : memref<1x8x19x16xf32, #tpu.memory_space<vmem>>, vector<1x1x16x16xf32>
    %62 = vector.shape_cast %61 : vector<1x1x16x16xf32> to vector<16x16xf32>
    %63 = arith.addf %55, %62 : vector<16x16xf32>
    %c0_i32_36 = arith.constant 0 : i32
    %64 = arith.addi %54, %c0_i32_36 : i32
    %65 = arith.index_cast %64 : i32 to index
    %66 = memref.load %arg3[%65] : memref<12xi32, #tpu.memory_space<smem>>
    %c0_37 = arith.constant 0 : index
    %67 = arith.index_cast %66 : i32 to index
    %c0_38 = arith.constant 0 : index
    %c0_39 = arith.constant 0 : index
    %68 = vector.load %arg5[%c0_37, %67, %c0_38, %c0_39] : memref<1x8x16x19xf32, #tpu.memory_space<vmem>>, vector<1x1x16x16xf32>
    %69 = vector.shape_cast %68 : vector<1x1x16x16xf32> to vector<16x16xf32>
    %70 = arith.addf %56, %69 : vector<16x16xf32>
    %c1_i32_40 = arith.constant 1 : i32
    %71 = arith.addi %54, %c1_i32_40 : i32
    %72 = arith.index_cast %71 : i32 to index
    %73 = memref.load %arg2[%72] : memref<12xi32, #tpu.memory_space<smem>>
    %c0_41 = arith.constant 0 : index
    %74 = arith.index_cast %73 : i32 to index
    %c2_42 = arith.constant 2 : index
    %c0_43 = arith.constant 0 : index
    %75 = vector.load %arg4[%c0_41, %74, %c2_42, %c0_43] : memref<1x8x19x16xf32, #tpu.memory_space<vmem>>, vector<1x1x16x16xf32>
    %76 = vector.shape_cast %75 : vector<1x1x16x16xf32> to vector<16x16xf32>
    %77 = arith.addf %63, %76 : vector<16x16xf32>
    %c1_i32_44 = arith.constant 1 : i32
    %78 = arith.addi %54, %c1_i32_44 : i32
    %79 = arith.index_cast %78 : i32 to index
    %80 = memref.load %arg3[%79] : memref<12xi32, #tpu.memory_space<smem>>
    %c0_45 = arith.constant 0 : index
    %81 = arith.index_cast %80 : i32 to index
    %c0_46 = arith.constant 0 : index
    %c2_47 = arith.constant 2 : index
    %82 = vector.load %arg5[%c0_45, %81, %c0_46, %c2_47] : memref<1x8x16x19xf32, #tpu.memory_space<vmem>>, vector<1x1x16x16xf32>
    %83 = vector.shape_cast %82 : vector<1x1x16x16xf32> to vector<16x16xf32>
    %84 = arith.addf %70, %83 : vector<16x16xf32>
    %c2_i32_48 = arith.constant 2 : i32
    %85 = arith.addi %54, %c2_i32_48 : i32
    %86 = arith.index_cast %85 : i32 to index
    %87 = memref.load %arg2[%86] : memref<12xi32, #tpu.memory_space<smem>>
    %c0_49 = arith.constant 0 : index
    %88 = arith.index_cast %87 : i32 to index
    %c3_50 = arith.constant 3 : index
    %c0_51 = arith.constant 0 : index
    %89 = vector.load %arg4[%c0_49, %88, %c3_50, %c0_51] : memref<1x8x19x16xf32, #tpu.memory_space<vmem>>, vector<1x1x16x16xf32>
    %90 = vector.shape_cast %89 : vector<1x1x16x16xf32> to vector<16x16xf32>
    %91 = arith.addf %77, %90 : vector<16x16xf32>
    %c2_i32_52 = arith.constant 2 : i32
    %92 = arith.addi %54, %c2_i32_52 : i32
    %93 = arith.index_cast %92 : i32 to index
    %94 = memref.load %arg3[%93] : memref<12xi32, #tpu.memory_space<smem>>
    %c0_53 = arith.constant 0 : index
    %95 = arith.index_cast %94 : i32 to index
    %c0_54 = arith.constant 0 : index
    %c3_55 = arith.constant 3 : index
    %96 = vector.load %arg5[%c0_53, %95, %c0_54, %c3_55] : memref<1x8x16x19xf32, #tpu.memory_space<vmem>>, vector<1x1x16x16xf32>
    %97 = vector.shape_cast %96 : vector<1x1x16x16xf32> to vector<16x16xf32>
    %98 = arith.addf %84, %97 : vector<16x16xf32>
    %c0_56 = arith.constant 0 : index
    %c1 = arith.constant 1 : index
    %c0_57 = arith.constant 0 : index
    %c0_58 = arith.constant 0 : index
    %99 = vector.load %arg6[%c0_56, %c1, %c0_57, %c0_58] : memref<1x4x16x16xf32, #tpu.memory_space<vmem>>, vector<1x1x16x16xf32>
    %100 = vector.shape_cast %99 : vector<1x1x16x16xf32> to vector<16x16xf32>
    %101 = vector.shape_cast %91 : vector<16x16xf32> to vector<1x1x16x16xf32>
    tpu.vector_store %arg6[%c0_56, %c1, %c0_57, %c0_58], %101 {strides = array<i32>} : memref<1x4x16x16xf32, #tpu.memory_space<vmem>>, vector<1x1x16x16xf32>,
    %c0_59 = arith.constant 0 : index
    %c1_60 = arith.constant 1 : index
    %c0_61 = arith.constant 0 : index
    %c0_62 = arith.constant 0 : index
    %102 = vector.load %arg7[%c0_59, %c1_60, %c0_61, %c0_62] : memref<1x4x16x16xf32, #tpu.memory_space<vmem>>, vector<1x1x16x16xf32>
    %103 = vector.shape_cast %102 : vector<1x1x16x16xf32> to vector<16x16xf32>
    %104 = vector.shape_cast %98 : vector<16x16xf32> to vector<1x1x16x16xf32>
    tpu.vector_store %arg7[%c0_59, %c1_60, %c0_61, %c0_62], %104 {strides = array<i32>} : memref<1x4x16x16xf32, #tpu.memory_space<vmem>>, vector<1x1x16x16xf32>,
    %c2_i32_63 = arith.constant 2 : i32
    %105 = arith.addi %0, %c2_i32_63 : i32
    %c3_i32_64 = arith.constant 3 : i32
    %106 = arith.muli %105, %c3_i32_64 : i32
    %cst_65 = arith.constant 0.000000e+00 : f32
    %107 = vector.broadcast %cst_65 : f32 to vector<16x16xf32>
    %cst_66 = arith.constant 0.000000e+00 : f32
    %108 = vector.broadcast %cst_66 : f32 to vector<16x16xf32>
    %c0_i32_67 = arith.constant 0 : i32
    %109 = arith.addi %106, %c0_i32_67 : i32
    %110 = arith.index_cast %109 : i32 to index
    %111 = memref.load %arg2[%110] : memref<12xi32, #tpu.memory_space<smem>>
    %c0_68 = arith.constant 0 : index
    %112 = arith.index_cast %111 : i32 to index
    %c0_69 = arith.constant 0 : index
    %c0_70 = arith.constant 0 : index
    %113 = vector.load %arg4[%c0_68, %112, %c0_69, %c0_70] : memref<1x8x19x16xf32, #tpu.memory_space<vmem>>, vector<1x1x16x16xf32>
    %114 = vector.shape_cast %113 : vector<1x1x16x16xf32> to vector<16x16xf32>
    %115 = arith.addf %107, %114 : vector<16x16xf32>
    %c0_i32_71 = arith.constant 0 : i32
    %116 = arith.addi %106, %c0_i32_71 : i32
    %117 = arith.index_cast %116 : i32 to index
    %118 = memref.load %arg3[%117] : memref<12xi32, #tpu.memory_space<smem>>
    %c0_72 = arith.constant 0 : index
    %119 = arith.index_cast %118 : i32 to index
    %c0_73 = arith.constant 0 : index
    %c0_74 = arith.constant 0 : index
    %120 = vector.load %arg5[%c0_72, %119, %c0_73, %c0_74] : memref<1x8x16x19xf32, #tpu.memory_space<vmem>>, vector<1x1x16x16xf32>
    %121 = vector.shape_cast %120 : vector<1x1x16x16xf32> to vector<16x16xf32>
    %122 = arith.addf %108, %121 : vector<16x16xf32>
    %c1_i32_75 = arith.constant 1 : i32
    %123 = arith.addi %106, %c1_i32_75 : i32
    %124 = arith.index_cast %123 : i32 to index
    %125 = memref.load %arg2[%124] : memref<12xi32, #tpu.memory_space<smem>>
    %c0_76 = arith.constant 0 : index
    %126 = arith.index_cast %125 : i32 to index
    %c2_77 = arith.constant 2 : index
    %c0_78 = arith.constant 0 : index
    %127 = vector.load %arg4[%c0_76, %126, %c2_77, %c0_78] : memref<1x8x19x16xf32, #tpu.memory_space<vmem>>, vector<1x1x16x16xf32>
    %128 = vector.shape_cast %127 : vector<1x1x16x16xf32> to vector<16x16xf32>
    %129 = arith.addf %115, %128 : vector<16x16xf32>
    %c1_i32_79 = arith.constant 1 : i32
    %130 = arith.addi %106, %c1_i32_79 : i32
    %131 = arith.index_cast %130 : i32 to index
    %132 = memref.load %arg3[%131] : memref<12xi32, #tpu.memory_space<smem>>
    %c0_80 = arith.constant 0 : index
    %133 = arith.index_cast %132 : i32 to index
    %c0_81 = arith.constant 0 : index
    %c2_82 = arith.constant 2 : index
    %134 = vector.load %arg5[%c0_80, %133, %c0_81, %c2_82] : memref<1x8x16x19xf32, #tpu.memory_space<vmem>>, vector<1x1x16x16xf32>
    %135 = vector.shape_cast %134 : vector<1x1x16x16xf32> to vector<16x16xf32>
    %136 = arith.addf %122, %135 : vector<16x16xf32>
    %c2_i32_83 = arith.constant 2 : i32
    %137 = arith.addi %106, %c2_i32_83 : i32
    %138 = arith.index_cast %137 : i32 to index
    %139 = memref.load %arg2[%138] : memref<12xi32, #tpu.memory_space<smem>>
    %c0_84 = arith.constant 0 : index
    %140 = arith.index_cast %139 : i32 to index
    %c3_85 = arith.constant 3 : index
    %c0_86 = arith.constant 0 : index
    %141 = vector.load %arg4[%c0_84, %140, %c3_85, %c0_86] : memref<1x8x19x16xf32, #tpu.memory_space<vmem>>, vector<1x1x16x16xf32>
    %142 = vector.shape_cast %141 : vector<1x1x16x16xf32> to vector<16x16xf32>
    %143 = arith.addf %129, %142 : vector<16x16xf32>
    %c2_i32_87 = arith.constant 2 : i32
    %144 = arith.addi %106, %c2_i32_87 : i32
    %145 = arith.index_cast %144 : i32 to index
    %146 = memref.load %arg3[%145] : memref<12xi32, #tpu.memory_space<smem>>
    %c0_88 = arith.constant 0 : index
    %147 = arith.index_cast %146 : i32 to index
    %c0_89 = arith.constant 0 : index
    %c3_90 = arith.constant 3 : index
    %148 = vector.load %arg5[%c0_88, %147, %c0_89, %c3_90] : memref<1x8x16x19xf32, #tpu.memory_space<vmem>>, vector<1x1x16x16xf32>
    %149 = vector.shape_cast %148 : vector<1x1x16x16xf32> to vector<16x16xf32>
    %150 = arith.addf %136, %149 : vector<16x16xf32>
    %c0_91 = arith.constant 0 : index
    %c2_92 = arith.constant 2 : index
    %c0_93 = arith.constant 0 : index
    %c0_94 = arith.constant 0 : index
    %151 = vector.load %arg6[%c0_91, %c2_92, %c0_93, %c0_94] : memref<1x4x16x16xf32, #tpu.memory_space<vmem>>, vector<1x1x16x16xf32>
    %152 = vector.shape_cast %151 : vector<1x1x16x16xf32> to vector<16x16xf32>
    %153 = vector.shape_cast %143 : vector<16x16xf32> to vector<1x1x16x16xf32>
    tpu.vector_store %arg6[%c0_91, %c2_92, %c0_93, %c0_94], %153 {strides = array<i32>} : memref<1x4x16x16xf32, #tpu.memory_space<vmem>>, vector<1x1x16x16xf32>,
    %c0_95 = arith.constant 0 : index
    %c2_96 = arith.constant 2 : index
    %c0_97 = arith.constant 0 : index
    %c0_98 = arith.constant 0 : index
    %154 = vector.load %arg7[%c0_95, %c2_96, %c0_97, %c0_98] : memref<1x4x16x16xf32, #tpu.memory_space<vmem>>, vector<1x1x16x16xf32>
    %155 = vector.shape_cast %154 : vector<1x1x16x16xf32> to vector<16x16xf32>
    %156 = vector.shape_cast %150 : vector<16x16xf32> to vector<1x1x16x16xf32>
    tpu.vector_store %arg7[%c0_95, %c2_96, %c0_97, %c0_98], %156 {strides = array<i32>} : memref<1x4x16x16xf32, #tpu.memory_space<vmem>>, vector<1x1x16x16xf32>,
    %c3_i32_99 = arith.constant 3 : i32
    %157 = arith.addi %0, %c3_i32_99 : i32
    %c3_i32_100 = arith.constant 3 : i32
    %158 = arith.muli %157, %c3_i32_100 : i32
    %cst_101 = arith.constant 0.000000e+00 : f32
    %159 = vector.broadcast %cst_101 : f32 to vector<16x16xf32>
    %cst_102 = arith.constant 0.000000e+00 : f32
    %160 = vector.broadcast %cst_102 : f32 to vector<16x16xf32>
    %c0_i32_103 = arith.constant 0 : i32
    %161 = arith.addi %158, %c0_i32_103 : i32
    %162 = arith.index_cast %161 : i32 to index
    %163 = memref.load %arg2[%162] : memref<12xi32, #tpu.memory_space<smem>>
    %c0_104 = arith.constant 0 : index
    %164 = arith.index_cast %163 : i32 to index
    %c0_105 = arith.constant 0 : index
    %c0_106 = arith.constant 0 : index
    %165 = vector.load %arg4[%c0_104, %164, %c0_105, %c0_106] : memref<1x8x19x16xf32, #tpu.memory_space<vmem>>, vector<1x1x16x16xf32>
    %166 = vector.shape_cast %165 : vector<1x1x16x16xf32> to vector<16x16xf32>
    %167 = arith.addf %159, %166 : vector<16x16xf32>
    %c0_i32_107 = arith.constant 0 : i32
    %168 = arith.addi %158, %c0_i32_107 : i32
    %169 = arith.index_cast %168 : i32 to index
    %170 = memref.load %arg3[%169] : memref<12xi32, #tpu.memory_space<smem>>
    %c0_108 = arith.constant 0 : index
    %171 = arith.index_cast %170 : i32 to index
    %c0_109 = arith.constant 0 : index
    %c0_110 = arith.constant 0 : index
    %172 = vector.load %arg5[%c0_108, %171, %c0_109, %c0_110] : memref<1x8x16x19xf32, #tpu.memory_space<vmem>>, vector<1x1x16x16xf32>
    %173 = vector.shape_cast %172 : vector<1x1x16x16xf32> to vector<16x16xf32>
    %174 = arith.addf %160, %173 : vector<16x16xf32>
    %c1_i32_111 = arith.constant 1 : i32
    %175 = arith.addi %158, %c1_i32_111 : i32
    %176 = arith.index_cast %175 : i32 to index
    %177 = memref.load %arg2[%176] : memref<12xi32, #tpu.memory_space<smem>>
    %c0_112 = arith.constant 0 : index
    %178 = arith.index_cast %177 : i32 to index
    %c2_113 = arith.constant 2 : index
    %c0_114 = arith.constant 0 : index
    %179 = vector.load %arg4[%c0_112, %178, %c2_113, %c0_114] : memref<1x8x19x16xf32, #tpu.memory_space<vmem>>, vector<1x1x16x16xf32>
    %180 = vector.shape_cast %179 : vector<1x1x16x16xf32> to vector<16x16xf32>
    %181 = arith.addf %167, %180 : vector<16x16xf32>
    %c1_i32_115 = arith.constant 1 : i32
    %182 = arith.addi %158, %c1_i32_115 : i32
    %183 = arith.index_cast %182 : i32 to index
    %184 = memref.load %arg3[%183] : memref<12xi32, #tpu.memory_space<smem>>
    %c0_116 = arith.constant 0 : index
    %185 = arith.index_cast %184 : i32 to index
    %c0_117 = arith.constant 0 : index
    %c2_118 = arith.constant 2 : index
    %186 = vector.load %arg5[%c0_116, %185, %c0_117, %c2_118] : memref<1x8x16x19xf32, #tpu.memory_space<vmem>>, vector<1x1x16x16xf32>
    %187 = vector.shape_cast %186 : vector<1x1x16x16xf32> to vector<16x16xf32>
    %188 = arith.addf %174, %187 : vector<16x16xf32>
    %c2_i32_119 = arith.constant 2 : i32
    %189 = arith.addi %158, %c2_i32_119 : i32
    %190 = arith.index_cast %189 : i32 to index
    %191 = memref.load %arg2[%190] : memref<12xi32, #tpu.memory_space<smem>>
    %c0_120 = arith.constant 0 : index
    %192 = arith.index_cast %191 : i32 to index
    %c3_121 = arith.constant 3 : index
    %c0_122 = arith.constant 0 : index
    %193 = vector.load %arg4[%c0_120, %192, %c3_121, %c0_122] : memref<1x8x19x16xf32, #tpu.memory_space<vmem>>, vector<1x1x16x16xf32>
    %194 = vector.shape_cast %193 : vector<1x1x16x16xf32> to vector<16x16xf32>
    %195 = arith.addf %181, %194 : vector<16x16xf32>
    %c2_i32_123 = arith.constant 2 : i32
    %196 = arith.addi %158, %c2_i32_123 : i32
    %197 = arith.index_cast %196 : i32 to index
    %198 = memref.load %arg3[%197] : memref<12xi32, #tpu.memory_space<smem>>
    %c0_124 = arith.constant 0 : index
    %199 = arith.index_cast %198 : i32 to index
    %c0_125 = arith.constant 0 : index
    %c3_126 = arith.constant 3 : index
    %200 = vector.load %arg5[%c0_124, %199, %c0_125, %c3_126] : memref<1x8x16x19xf32, #tpu.memory_space<vmem>>, vector<1x1x16x16xf32>
    %201 = vector.shape_cast %200 : vector<1x1x16x16xf32> to vector<16x16xf32>
    %202 = arith.addf %188, %201 : vector<16x16xf32>
    %c0_127 = arith.constant 0 : index
    %c3_128 = arith.constant 3 : index
    %c0_129 = arith.constant 0 : index
    %c0_130 = arith.constant 0 : index
    %203 = vector.load %arg6[%c0_127, %c3_128, %c0_129, %c0_130] : memref<1x4x16x16xf32, #tpu.memory_space<vmem>>, vector<1x1x16x16xf32>
    %204 = vector.shape_cast %203 : vector<1x1x16x16xf32> to vector<16x16xf32>
    %205 = vector.shape_cast %195 : vector<16x16xf32> to vector<1x1x16x16xf32>
    tpu.vector_store %arg6[%c0_127, %c3_128, %c0_129, %c0_130], %205 {strides = array<i32>} : memref<1x4x16x16xf32, #tpu.memory_space<vmem>>, vector<1x1x16x16xf32>,
    %c0_131 = arith.constant 0 : index
    %c3_132 = arith.constant 3 : index
    %c0_133 = arith.constant 0 : index
    %c0_134 = arith.constant 0 : index
    %206 = vector.load %arg7[%c0_131, %c3_132, %c0_133, %c0_134] : memref<1x4x16x16xf32, #tpu.memory_space<vmem>>, vector<1x1x16x16xf32>
    %207 = vector.shape_cast %206 : vector<1x1x16x16xf32> to vector<16x16xf32>
    %208 = vector.shape_cast %202 : vector<16x16xf32> to vector<1x1x16x16xf32>
    tpu.vector_store %arg7[%c0_131, %c3_132, %c0_133, %c0_134], %208 {strides = array<i32>} : memref<1x4x16x16xf32, #tpu.memory_space<vmem>>, vector<1x1x16x16xf32>,
    return
  }
  func.func @transform_0(%arg0: i32, %arg1: i32, %arg2: memref<12xi32, #tpu.memory_space<smem>>, %arg3: memref<12xi32, #tpu.memory_space<smem>>) -> (i32, i32, i32, i32) {
    %c0_i32 = arith.constant 0 : i32
    %c0_i32_0 = arith.constant 0 : i32
    %c0_i32_1 = arith.constant 0 : i32
    %c0_i32_2 = arith.constant 0 : i32
    return %arg0, %c0_i32, %c0_i32_0, %c0_i32_1 : i32, i32, i32, i32
  }
  func.func @transform_1(%arg0: i32, %arg1: i32, %arg2: memref<12xi32, #tpu.memory_space<smem>>, %arg3: memref<12xi32, #tpu.memory_space<smem>>) -> (i32, i32, i32, i32) {
    %c0_i32 = arith.constant 0 : i32
    %c0_i32_0 = arith.constant 0 : i32
    %c0_i32_1 = arith.constant 0 : i32
    %c0_i32_2 = arith.constant 0 : i32
    return %arg0, %c0_i32, %c0_i32_0, %c0_i32_1 : i32, i32, i32, i32
  }
  func.func @transform_2(%arg0: i32, %arg1: i32, %arg2: memref<12xi32, #tpu.memory_space<smem>>, %arg3: memref<12xi32, #tpu.memory_space<smem>>) -> (i32, i32, i32, i32) {
    %c0_i32 = arith.constant 0 : i32
    %c0_i32_0 = arith.constant 0 : i32
    %c0_i32_1 = arith.constant 0 : i32
    return %arg0, %arg1, %c0_i32, %c0_i32_0 : i32, i32, i32, i32
  }
  func.func @transform_3(%arg0: i32, %arg1: i32, %arg2: memref<12xi32, #tpu.memory_space<smem>>, %arg3: memref<12xi32, #tpu.memory_space<smem>>) -> (i32, i32, i32, i32) {
    %c0_i32 = arith.constant 0 : i32
    %c0_i32_0 = arith.constant 0 : i32
    %c0_i32_1 = arith.constant 0 : i32
    return %arg0, %arg1, %c0_i32, %c0_i32_0 : i32, i32, i32, i32
  }
}

</mosaic_0001>

<bundles_post_ra>
// kernel: tpu_custom_call.1
= control target key start
LH: loop header
LB: loop body
LE: loop exit
PB: predicated region body
PF: predicated region fallthrough
CT: control target
= control target key end

     0   :  { %s1298_s0 = inlined_call_operand.vmem [shape: s32[12], index: 0, kind: input, shape index: {}]   ;;  %s1299_s2 = inlined_call_operand.vmem [shape: f32[2,8,19,16], index: 2, kind: input, shape index: {}]   ;;  %s1300_s3 = inlined_call_operand.vmem [shape: f32[2,8,16,19], index: 3, kind: input, shape index: {}]   ;;  %s1301_s4 = inlined_call_operand.hbm [shape: f32[2,4,16,16], index: 4, kind: output, shape index: {0}]   ;;  %s1302_s5 = inlined_call_operand.hbm [shape: f32[2,4,16,16], index: 5, kind: output, shape index: {1}]   ;;  %s1303_s1 = inlined_call_operand.vmem [shape: s32[12], index: 1, kind: input, shape index: {}]  }
   0x1   :  { %1304 = sst [smem:[#allocation12_spill]] %s1299_s2  ;;  %s11_s20 = sshll.u32 %s1298_s0, 4  ;;  %s12_s20 = int_to_ptr.vmem [resolvable:$true] %s11_s20 }
   0x2   :  { %1305 = sst [smem:[#allocation13_spill]] %s1300_s3  ;;  %s15_s23 = sshll.u32 %s1303_s1, 4  ;;  %s16_s23 = int_to_ptr.vmem [resolvable:$true] %s15_s23 }
   0x3   :  { %s844_s24 = scalar_lea.vmem %s12_s20, 16  ;;  %p849_p1 = scmp.lt.s32.totalorder %s12_s20, %s12_s20 }
   0x4   :  { %p845_p0 = scmp.ne.s32.totalorder %s12_s20, %s844_s24  ;;  %p850_p2 = scmp.lt.s32.totalorder %s844_s24, %s844_s24 }
   0x6   :  { %p851_p3 = por %p850_p2, %p849_p1 }
   0x8   :  { %p852_p4 = pnand %p851_p3, %p845_p0 }
   0xa   :  { %855 = shalt.err (!%p852_p4)  }
   0xb   :  { %s978_s25 = smov [#allocation3]   ;;  %s856_s26 = scalar_lea.vmem %s16_s23, 16 }
   0xc   :  { %14 = dma.vmem_to_smem %s12_s20, 16, %s978_s25, [#allocation2] }
   0xd   :  { %p857_p5 = scmp.ne.s32.totalorder %s16_s23, %s856_s26  ;;  %p861_p6 = scmp.lt.s32.totalorder %s16_s23, %s16_s23 }
   0xe   :  { %p862_p7 = scmp.lt.s32.totalorder %s856_s26, %s856_s26 }
  0x10   :  { %p863_p8 = por %p862_p7, %p861_p6 }
  0x12   :  { %p864_p9 = pnand %p863_p8, %p857_p5 }
  0x14   :  { %867 = shalt.err (!%p864_p9)  }
  0x15   :  { %s979_s0 = smov [#allocation4]  }
  0x16   :  { %18 = dma.vmem_to_smem %s16_s23, 16, %s979_s0, [#allocation2] }
  0x17   :  { %944 = dma.done.wait [#allocation2], 32 }
  0x18   :  { %945 = vsyncadd [#allocation2], 4294967264 }
  0x19   :  { %20 = sfence }
  0x1a   :  { %21 = vsyncpa [#allocation6], 0 }
  0x1b   :  { %23 = vsyncpa [#allocation6 + $0x1], 0 }
  0x1c   :  { %24 = vsyncpa [#allocation8], 0 }
  0x1d   :  { %26 = vsyncpa [#allocation8 + $0x1], 0  ;;  %s1022_s1 = smov 0   ;;  %s1024_s27 = smov 0  }
  0x1e   :  { %s1026_s28 = smov 0   ;;  %s1028_s29 = smov 0  }
  0x1f   :  { %s1030_s30 = smov 0   ;;  %s1032_s6 = smov 0  }
  0x20 LB: > { %s710_s7 = sadd.s32 4294967295, %s976_s6   ;;  %s711_s8 = sadd.s32 4294967294, %s976_s6   ;;  %s976_s6 = sphi %s1032_s6, %s32_s6   ;;  %s972_s30 = sphi %s1030_s30, %s1316_s30   ;;  %s968_s29 = sphi %s1028_s29, %s1315_s29   ;;  %s964_s28 = sphi %s1026_s28, %s1314_s28   ;;  %s960_s27 = sphi %s1024_s27, %s1313_s27   ;;  %s956_s1 = sphi %s1022_s1, %s1312_s1  }
  0x21   : > { %s44_s9 = sadd.s32 1, %s972_s30  ;;  %s105_s10 = sadd.s32 1, %s964_s28 }
  0x22   : > { %p46_p10 = scmp.ge.s32.totalorder %s44_s9, 2  ;;  %p115_p11 = scmp.ne.s32.totalorder %s964_s28, %s960_s27 }
  0x23   : > { %p116_p12 = scmp.eq.s32.totalorder %s710_s7, 1  ;;  %p121_p13 = scmp.ne.s32.totalorder %s960_s27, %s956_s1 }
  0x24   : > { %s1318_s9 = smov (%p46_p10, %s44_s9), 0  ;;  %p122_p1 = scmp.eq.s32.totalorder %s711_s8, 1 }
  0x25   : > { %p1062_p0 = por %p116_p12, %p115_p11  ;;  %s100_s12 = ssub.s32 %s972_s30, %s1318_s9 }
  0x26   : > { %p714_p2 = scmp.ge.s32.totalorder %s976_s6, 1  ;;  %p103_p3 = scmp.eq.s32.totalorder %s100_s12, 0 }
  0x27   : > { %p1069_p4 = por %p122_p1, %p121_p13  ;;  %p184_p5 = scmp.lt.s32.totalorder %s976_s6, 3 }
  0x28   : > { %s1075_s14 = scalar_select %p103_p3, %s964_s28, %s105_s10  }
  0x29   : > { %p185_p6 = pnand %p714_p2, %p184_p5 }
  0x2a   : > { %p218_p7 = scmp.lt.s32.totalorder (!%p185_p6), %s968_s29, 1  ;;  %s731_s15 = sld [smem:[#allocation4 + $0x4]] (!%p185_p6) }
  0x2b   : > { %188 = sbr.rel (%p185_p6) target bundleno = 213 (0xd5), region = 28  ;;  %s722_s17 = sld [smem:[#allocation4 + $0x1]] (!%p185_p6) }
  0x2c   : > { %s1308_s3 = sld [smem:[#allocation13_spill]] (!%p185_p6)  ;;  %s980_s7 = smov (!%p185_p6), 126  }
  0x2d   : > { %s744_s22 = sld [smem:[#allocation4 + $0x7]] (!%p185_p6) }
  0x2e   : > { %s757_s23 = sld [smem:[#allocation4 + $0xa]] (!%p185_p6) }
  0x2f   : > { %s725_s0 = sld [smem:[#allocation4 + $0x2]] (!%p185_p6) }
  0x30   : > { %s1079_s16 = scalar_select %p218_p7, %s968_s29, 1  ;;  %vm292_vm0 = vcmask 130048  }
  0x31   : > { %s732_s24 = sshll.u32 %s731_s15, 4  ;;  %s723_s26 = sshll.u32 %s722_s17, 4 }
  0x32   : > { %s774_s18 = sshll.u32 %s1079_s16, 7  ;;  %s734_s12 = sld [smem:[#allocation4 + $0x5]] }
  0x33   : > { %s1085_s21 = scalar_lea.vmem %s1308_s3, %s774_s18  ;;  %s745_s10 = sshll.u32 %s744_s22, 4 }
  0x34   : > { %s323_s25 = scalar_lea.vmem %s1085_s21, %s732_s24  ;;  %s256_s8 = scalar_lea.vmem %s1085_s21, %s723_s26 }
  0x35   : > { %v324_v0 = vld [vmem:[%s323_s25] sm:$0xff]  ;;  %v325_v2 = vld [vmem:[%s323_s25 + $0x8] sm:$0xff]  ;;  %s391_s18 = scalar_lea.vmem %s1085_s21, %s745_s10  ;;  %s758_s15 = sshll.u32 %s757_s23, 4 }
  0x36   : > { %328 = vrot.lane.b32.xlu1 %v324_v0, %s980_s7  ;;  %v257_v1 = vld [vmem:[%s256_s8] sm:$0xff]  ;;  %v258_v3 = vld [vmem:[%s256_s8 + $0x8] sm:$0xff]  ;;  %s747_s17 = sld [smem:[#allocation4 + $0x8]]  ;;  %s459_s20 = scalar_lea.vmem %s1085_s21, %s758_s15 }
  0x37   : > { %261 = vrot.lane.b32.xlu0 %v257_v1, %s980_s7  ;;  %v393_v4 = vld [vmem:[%s391_s18 + $0x8] sm:$0xff]  ;;  %s760_s19 = sld [smem:[#allocation4 + $0xb]]  ;;  %v392_v5 = vld [vmem:[%s391_s18] sm:$0xff]  ;;  %s726_s22 = sshll.u32 %s725_s0, 4 }
  0x38   : > { %v461_v6 = vld [vmem:[%s459_s20 + $0x8] sm:$0xff]  ;;  %s735_s24 = sshll.u32 %s734_s12, 4  ;;  %s279_s25 = scalar_lea.vmem %s1085_s21, %s726_s22  ;;  %v460_v7 = vld [vmem:[%s459_s20] sm:$0xff] }
  0x39   : > { %s777_s23 = smul.u32 192, %s1079_s16  ;;  %s346_s26 = scalar_lea.vmem %s1085_s21, %s735_s24  ;;  %v281_v8 = vld [vmem:[%s279_s25 + $0x8] sm:$0xff]  ;;  %v280_v9 = vld [vmem:[%s279_s25] sm:$0xff] }
  0x3a   : > { %330 = vrot.lane.b32.xlu1 %v325_v2, %s980_s7  ;;  %s232_s18 = sld [smem:[#allocation3]]  ;;  %s1103_s0 = sand.u32 1, %s960_s27   ;;  %v348_v10 = vld [vmem:[%s346_s26 + $0x8] sm:$0xff]  ;;  %v347_v11 = vld [vmem:[%s346_s26] sm:$0xff] }
  0x3b   : > { %263 = vrot.lane.b32.xlu0 %v258_v3, %s980_s7  ;;  %s721_s12 = sld [smem:[#allocation3 + $0x1]]  ;;  %s981_s16 = smov 125  }
  0x3c   : > { %s748_s8 = sshll.u32 %s747_s17, 4  ;;  %s1309_s2 = sld [smem:[#allocation12_spill]] }
  0x3d   : > { %s761_s10 = sshll.u32 %s760_s19, 4  ;;  %s414_s17 = scalar_lea.vmem %s1085_s21, %s748_s8 }
  0x3e   : > { %398 = vrot.lane.b32.xlu1 %v393_v4, %s980_s7  ;;  %s1113_s20 = scalar_lea.vmem %s1085_s21, %s761_s10  ;;  %s1119_s24 = sld [smem:[#allocation3 + $0x3]]  ;;  %v416_v12 = vld [vmem:[%s414_s17 + $0x8] sm:$0xff]  ;;  %v415_v15 = vld [vmem:[%s414_s17] sm:$0xff] }
  0x3f   : > { %396 = vrot.lane.b32.xlu0 %v392_v5, %s980_s7  ;;  %s1121_s25 = sld [smem:[#allocation3 + $0x4]]  ;;  %v484_v20 = vld [vmem:[%s1113_s20 + $0x8] sm:$0xff]  ;;  %v483_v23 = vld [vmem:[%s1113_s20] sm:$0xff] }
  0x40   : > { %s233_s3 = smul.u32 24, %s232_s18  ;;  %s1124_s8 = sld [smem:[#allocation3 + $0x5]] }
  0x41   : > { %s1127_s15 = sld [smem:[#allocation3 + $0x6]] }
  0x42   : > { %466 = vrot.lane.b32.xlu1 %v461_v6, %s980_s7  ;;  %s1108_s22 = scalar_lea.vmem %s1309_s2, %s777_s23  ;;  %s248_s23 = smul.u32 24, %s721_s12 }
  0x43   : > { %464 = vrot.lane.b32.xlu0 %v460_v7, %s980_s7  ;;  %s1116_s7 = sld [smem:[#allocation3 + $0x2]]  ;;  %s234_s10 = scalar_lea.vmem %s1108_s22, %s233_s3 }
  0x44   : > { %v235_v13 = vld [vmem:[%s234_s10] sm:$0xff]  ;;  %v236_v14 = vld [vmem:[%s234_s10 + $0x8] sm:$0xff]  ;;  %s249_s26 = scalar_lea.vmem %s1108_s22, %s248_s23  ;;  %s1131_s18 = sld [smem:[#allocation3 + $0x7]] }
  0x45   : > { %v250_v16 = vld [vmem:[%s249_s26 + $0x2] sm:$0xff]  ;;  %v251_v17 = vld [vmem:[%s249_s26 + $0xa] sm:$0xff]  ;;  %s1134_s3 = sld [smem:[#allocation3 + $0x8]]  ;;  %s300_s19 = smul.u32 24, %s1119_s24 }
  0x46   : > { %286 = vrot.lane.b32.xlu1 %v281_v8, %s981_s16  ;;  %v252_v18 = vadd.f32 %v250_v16, %v235_v13  ;;  %v253_v19 = vadd.f32 %v251_v17, %v236_v14  ;;  %s1138_s10 = sld [smem:[#allocation3 + $0x9]]  ;;  %s315_s17 = smul.u32 24, %s1121_s25 }
  0x47   : > { %284 = vrot.lane.b32.xlu0 %v280_v9, %s981_s16  ;;  %s338_s26 = smul.u32 24, %s1124_s8 }
  0x48   : > { %s316_s24 = scalar_lea.vmem %s1108_s22, %s315_s17  ;;  %s368_s2 = smul.u32 24, %s1127_s15 }
  0x49   : > { %s271_s12 = smul.u32 24, %s1116_s7  ;;  %s301_s7 = scalar_lea.vmem %s1108_s22, %s300_s19  ;;  %v317_v28 = vld [vmem:[%s316_s24 + $0x2] sm:$0xff]  ;;  %v318_v29 = vld [vmem:[%s316_s24 + $0xa] sm:$0xff] }
  0x4a   : > { %353 = vrot.lane.b32.xlu1 %v348_v10, %s981_s16  ;;  %v302_v26 = vld [vmem:[%s301_s7] sm:$0xff]  ;;  %v303_v27 = vld [vmem:[%s301_s7 + $0x8] sm:$0xff]  ;;  %s339_s25 = scalar_lea.vmem %s1108_s22, %s338_s26  ;;  %s1310_s19 = sshll.u32 %s1103_s0, 6 }
  0x4b   : > { %351 = vrot.lane.b32.xlu0 %v347_v11, %s981_s16  ;;  %s272_s23 = scalar_lea.vmem %s1108_s22, %s271_s12  ;;  %s383_s12 = smul.u32 24, %s1131_s18  ;;  %v319_v30 = vadd.f32 %v317_v28, %v302_v26  ;;  %v320_v31 = vadd.f32 %v318_v29, %v303_v27  ;;  %v340_v32 = vld [vmem:[%s339_s25 + $0x3] sm:$0xff]  ;;  %v341_v33 = vld [vmem:[%s339_s25 + $0xb] sm:$0xff] }
  0x4c   : > { %v273_v21 = vld [vmem:[%s272_s23 + $0x3] sm:$0xff]  ;;  %v274_v22 = vld [vmem:[%s272_s23 + $0xb] sm:$0xff]  ;;  %s1154_s8 = scalar_lea.vmem [#allocation5], %s1310_s19  ;;  %s369_s20 = scalar_lea.vmem %s1108_s22, %s368_s2 }
  0x4d   : > { %v275_v24 = vadd.f32 %v273_v21, %v252_v18  ;;  %v276_v25 = vadd.f32 %v274_v22, %v253_v19  ;;  %s406_s15 = smul.u32 24, %s1134_s3  ;;  %v370_v34 = vld [vmem:[%s369_s20] sm:$0xff]  ;;  %v371_v35 = vld [vmem:[%s369_s20 + $0x8] sm:$0xff]  ;;  %s384_s18 = scalar_lea.vmem %s1108_s22, %s383_s12  ;;  %v342_v36 = vadd.f32 %v340_v32, %v319_v30  ;;  %v343_v37 = vadd.f32 %v341_v33, %v320_v31 }
  0x4e   : > { %421 = vrot.lane.b32.xlu1 %v416_v12, %s981_s16  ;;  %s436_s23 = smul.u32 24, %s1138_s10  ;;  %v385_v38 = vld [vmem:[%s384_s18 + $0x2] sm:$0xff]  ;;  %v386_v39 = vld [vmem:[%s384_s18 + $0xa] sm:$0xff]  ;;  %s756_s7 = sld [smem:[#allocation3 + $0xa]] }
  0x4f   : > { %419 = vrot.lane.b32.xlu0 %v415_v15, %s981_s16  ;;  %293 = vst.msk [vmem:[%s1154_s8] sm:$0xff] %vm292_vm0, %v275_v24  ;;  %294 = vst.msk [vmem:[%s1154_s8 + $0x8] sm:$0xff] %vm292_vm0, %v276_v25  ;;  %s407_s17 = scalar_lea.vmem %s1108_s22, %s406_s15  ;;  %v387_v40 = vadd.f32 %v385_v38, %v370_v34  ;;  %v388_v41 = vadd.f32 %v386_v39, %v371_v35  ;;  %s759_s2 = sld [smem:[#allocation3 + $0xb]] }
  0x50   : > { %v408_v42 = vld [vmem:[%s407_s17 + $0x3] sm:$0xff]  ;;  %v409_v43 = vld [vmem:[%s407_s17 + $0xb] sm:$0xff]  ;;  %736 = vst.msk [vmem:[%s1154_s8 + $0x10] sm:$0xff] %vm292_vm0, %v342_v36  ;;  %737 = vst.msk [vmem:[%s1154_s8 + $0x18] sm:$0xff] %vm292_vm0, %v343_v37  ;;  %s775_s26 = sshll.u32 %s968_s29, 10  ;;  %s523_s25 = sshll.u32 %s1154_s8, 4  ;;  %s1186_s25 = int_to_ptr.vmem [resolvable:$true] %s523_s25 }
  0x51   : > { %v410_v44 = vadd.f32 %v408_v42, %v387_v40  ;;  %v411_v45 = vadd.f32 %v409_v43, %v388_v41  ;;  %s1184_s15 = scalar_lea.hbm %s1301_s4, %s775_s26  ;;  %s868_s18 = scalar_lea.vmem %s1186_s25, 1024 }
  0x52   : > { %489 = vrot.lane.b32.xlu1 %v484_v20, %s981_s16  ;;  %p869_p8 = scmp.ne.s32.totalorder %s1186_s25, %s868_s18 }
  0x53   : > { %487 = vrot.lane.b32.xlu0 %v483_v23, %s981_s16  ;;  %s437_s16 = scalar_lea.vmem %s1108_s22, %s436_s23  ;;  %749 = vst.msk [vmem:[%s1154_s8 + $0x20] sm:$0xff] %vm292_vm0, %v410_v44  ;;  %750 = vst.msk [vmem:[%s1154_s8 + $0x28] sm:$0xff] %vm292_vm0, %v411_v45  ;;  %s982_s23 = smov [#allocation5]  }
  0x54   : > { %s451_s3 = smul.u32 24, %s756_s7  ;;  %v438_v46 = vld [vmem:[%s437_s16] sm:$0xff]  ;;  %v439_v47 = vld [vmem:[%s437_s16 + $0x8] sm:$0xff]  ;;  %p870_p9 = pnand %p869_p8, %p1062_p0 }
  0x55   : > { %s474_s10 = smul.u32 24, %s759_s2  ;;  %s872_s17 = sshll.u32 %s982_s23, 4  ;;  %s873_s17 = int_to_ptr.vmem [resolvable:$false] %s872_s17 }
  0x56   : > { %s452_s24 = scalar_lea.vmem %s1108_s22, %s451_s3  ;;  %p871_p10 = pneg %p870_p9 }
  0x57   : > { %v453_v48 = vld [vmem:[%s452_s24 + $0x2] sm:$0xff]  ;;  %v454_v49 = vld [vmem:[%s452_s24 + $0xa] sm:$0xff]  ;;  %s475_s12 = scalar_lea.vmem %s1108_s22, %s474_s10  ;;  %s502_s22 = scalar_lea.sflag [#allocation6], %s1103_s0 }
  0x58   : > { %v455_v50 = vadd.f32 %v453_v48, %v438_v46  ;;  %v456_v51 = vadd.f32 %v454_v49, %v439_v47  ;;  %v476_v52 = vld [vmem:[%s475_s12 + $0x3] sm:$0xff]  ;;  %v477_v53 = vld [vmem:[%s475_s12 + $0xb] sm:$0xff]  ;;  %s874_s7 = scalar_lea.vmem %s873_s17, 2048  ;;  %p875_p11 = scmp.lt.s32.totalorder %s1186_s25, %s873_s17 }
  0x59   : > { %p876_p12 = scmp.lt.s32.totalorder %s874_s7, %s868_s18 }
  0x5a   : > { %v478_v54 = vadd.f32 %v476_v52, %v455_v50  ;;  %v479_v55 = vadd.f32 %v477_v53, %v456_v51 }
  0x5b   : > { %p877_p13 = por %p876_p12, %p875_p11 }
  0x5c   : > { %762 = vst.msk [vmem:[%s1154_s8 + $0x30] sm:$0xff] %vm292_vm0, %v478_v54  ;;  %763 = vst.msk [vmem:[%s1154_s8 + $0x38] sm:$0xff] %vm292_vm0, %v479_v55 }
  0x5d   : > { %p878_p1 = pnand %p877_p13, %p871_p10 }
  0x5f   : > { %881 = shalt.err (!%p878_p1)
}
  0x60   : > { %s882_s8 = scalar_lea.hbm %s1184_s15, 1024  ;;  %s886_s3 = scalar_lea.hbm %s1301_s4, 2048 }
  0x61   : > { %p883_p2 = scmp.ne.s32.totalorder %s1184_s15, %s882_s8  ;;  %p887_p6 = scmp.lt.s32.totalorder %s1184_s15, %s1301_s4 }
  0x62   : > { %p888_p7 = scmp.lt.s32.totalorder %s886_s3, %s882_s8 }
  0x63   : > { %p884_p3 = pnand %p883_p2, %p1062_p0 }
  0x64   : > { %p889_p8 = por %p888_p7, %p887_p6 }
  0x65   : > { %p885_p5 = pneg %p884_p3 }
  0x67   : > { %p890_p9 = pnand %p889_p8, %p885_p5 }
  0x69   : > { %893 = shalt.err (!%p890_p9)
}
  0x6a   : > { %s983_s12 = smov 128   ;;  %s984_s19 = smov 8  }
  0x6b   : > { %778 = dma.vmem_to_hbm [thread:$0]  (%p1062_p0), %s1186_s25, 1024, %s1184_s15, %s502_s22, %s983_s12, %s983_s12, %s984_s19  }
  0x6c   : > { %s239_s20 = sld [smem:[#allocation4]]  ;;  %s1311_s3 = sshll.u32 %s1103_s0, 6 }
  0x6d   : > { %s728_s18 = sld [smem:[#allocation4 + $0x3]]  ;;  %s1223_s10 = scalar_lea.vmem [#allocation7], %s1311_s3 }
  0x6e   : > { %s741_s23 = sld [smem:[#allocation4 + $0x6]] }
  0x6f   : > { %s754_s7 = sld [smem:[#allocation4 + $0x9]] }
  0x72   : > { %s720_s17 = sshll.u32 %s239_s20, 4 }
  0x73   : > { %s241_s8 = scalar_lea.vmem %s1085_s21, %s720_s17  ;;  %s729_s2 = sshll.u32 %s728_s18, 4 }
  0x74   : > { %v243_v62 = vld [vmem:[%s241_s8 + $0x8] sm:$0xff]  ;;  %v242_v0 = vld [vmem:[%s241_s8] sm:$0xff]  ;;  %s742_s25 = sshll.u32 %s741_s23, 4  ;;  %s308_s15 = scalar_lea.vmem %s1085_s21, %s729_s2 }
  0x75   : > { %v310_v3 = vld [vmem:[%s308_s15 + $0x8] sm:$0xff]  ;;  %s376_s22 = scalar_lea.vmem %s1085_s21, %s742_s25  ;;  %v309_v7 = vld [vmem:[%s308_s15] sm:$0xff]  ;;  %s755_s16 = sshll.u32 %s754_s7, 4 }
  0x76   : > { %v378_v11 = vld [vmem:[%s376_s22 + $0x8] sm:$0xff]  ;;  %s444_s24 = scalar_lea.vmem %s1085_s21, %s755_s16  ;;  %v377_v15 = vld [vmem:[%s376_s22] sm:$0xff]  ;;  %s542_s21 = sshll.u32 %s1223_s10, 4  ;;  %s1248_s21 = int_to_ptr.vmem [resolvable:$true] %s542_s21 }
  0x77   : > { %v446_v19 = vld [vmem:[%s444_s24 + $0x8] sm:$0xff]  ;;  %v445_v23 = vld [vmem:[%s444_s24] sm:$0xff]  ;;  %s1246_s23 = scalar_lea.hbm %s1302_s5, %s775_s26  ;;  %s507_s17 = scalar_lea.sflag [#allocation8], %s1103_s0 }
  0x78   : > { %s894_s7 = scalar_lea.vmem %s1248_s21, 1024  ;;  %s985_s8 = smov [#allocation7]  }
  0x79   : > { %p895_p10 = scmp.ne.s32.totalorder %s1248_s21, %s894_s7  ;;  %s898_s29 = sshll.u32 %s985_s8, 4  ;;  %s899_s29 = int_to_ptr.vmem [resolvable:$false] %s898_s29 }
  0x7a   : > { %s900_s2 = scalar_lea.vmem %s899_s29, 2048  ;;  %p901_p13 = scmp.lt.s32.totalorder %s1248_s21, %s899_s29 }
  0x7b   : > { %p896_p11 = pnand %p895_p10, %p1062_p0  ;;  %p902_p1 = scmp.lt.s32.totalorder %s900_s2, %s894_s7 }
  0x7d   : > { %p897_p12 = pneg %p896_p11  ;;  %p903_p2 = por %p902_p1, %p901_p13 }
  0x7f   : > { %p904_p3 = pnand %p903_p2, %p897_p12 }
  0xa8   : > { %v329_v56 = vpop.permute.xlu1 %328 }
  0xa9   : > { %v262_v57 = vpop.permute.xlu0 %261  ;;  %v334_v13 = vadd.f32 %v329_v56, %v309_v7 }
  0xaa   : > { %v267_v5 = vadd.f32 %v262_v57, %v242_v0 }
  0xac   : > { %v331_v58 = vpop.permute.xlu1 %330 }
  0xad   : > { %v264_v59 = vpop.permute.xlu0 %263  ;;  %v335_v9 = vadd.f32 %v331_v58, %v310_v3 }
  0xae   : > { %v268_v2 = vadd.f32 %v264_v59, %v243_v62 }
  0xb0   : > { %v399_v60 = vpop.permute.xlu1 %398 }
  0xb1   : > { %v397_v61 = vpop.permute.xlu0 %396  ;;  %v403_v17 = vadd.f32 %v399_v60, %v378_v11 }
  0xb2   : > { %v402_v21 = vadd.f32 %v397_v61, %v377_v15 }
  0xb4   : > { %v467_v63 = vpop.permute.xlu1 %466 }
  0xb5   : > { %v465_v1 = vpop.permute.xlu0 %464  ;;  %v471_v25 = vadd.f32 %v467_v63, %v446_v19 }
  0xb6   : > { %v470_v28 = vadd.f32 %v465_v1, %v445_v23 }
  0xb8   : > { %v287_v4 = vpop.permute.xlu1 %286 }
  0xb9   : > { %v291_v6 = vadd.f32 %v287_v4, %v268_v2  ;;  %v285_v8 = vpop.permute.xlu0 %284 }
  0xba   : > { %v290_v10 = vadd.f32 %v285_v8, %v267_v5 }
  0xbb   : > { %296 = vst.msk [vmem:[%s1223_s10 + $0x8] sm:$0xff] %vm292_vm0, %v291_v6 }
  0xbc   : > { %v354_v12 = vpop.permute.xlu1 %353  ;;  %295 = vst.msk [vmem:[%s1223_s10] sm:$0xff] %vm292_vm0, %v290_v10 }
  0xbd   : > { %v358_v14 = vadd.f32 %v354_v12, %v335_v9  ;;  %v352_v16 = vpop.permute.xlu0 %351 }
  0xbe   : > { %v357_v18 = vadd.f32 %v352_v16, %v334_v13 }
  0xbf   : > { %739 = vst.msk [vmem:[%s1223_s10 + $0x18] sm:$0xff] %vm292_vm0, %v358_v14 }
  0xc0   : > { %v422_v20 = vpop.permute.xlu1 %421  ;;  %738 = vst.msk [vmem:[%s1223_s10 + $0x10] sm:$0xff] %vm292_vm0, %v357_v18 }
  0xc1   : > { %v426_v22 = vadd.f32 %v422_v20, %v403_v17  ;;  %v420_v24 = vpop.permute.xlu0 %419 }
  0xc2   : > { %v425_v26 = vadd.f32 %v420_v24, %v402_v21 }
  0xc3   : > { %752 = vst.msk [vmem:[%s1223_s10 + $0x28] sm:$0xff] %vm292_vm0, %v426_v22 }
  0xc4   : > { %v490_v27 = vpop.permute.xlu1 %489  ;;  %751 = vst.msk [vmem:[%s1223_s10 + $0x20] sm:$0xff] %vm292_vm0, %v425_v26 }
  0xc5   : > { %v494_v29 = vadd.f32 %v490_v27, %v471_v25  ;;  %v488_v30 = vpop.permute.xlu0 %487 }
  0xc6   : > { %v493_v31 = vadd.f32 %v488_v30, %v470_v28 }
  0xc7   : > { %765 = vst.msk [vmem:[%s1223_s10 + $0x38] sm:$0xff] %vm292_vm0, %v494_v29 }
  0xc8   : > { %764 = vst.msk [vmem:[%s1223_s10 + $0x30] sm:$0xff] %vm292_vm0, %v493_v31 }
  0xc9   : > { %907 = shalt.err (!%p904_p3)
}
  0xca   : > { %s908_s26 = scalar_lea.hbm %s1246_s23, 1024  ;;  %s912_s15 = scalar_lea.hbm %s1302_s5, 2048 }
  0xcb   : > { %p909_p5 = scmp.ne.s32.totalorder %s1246_s23, %s908_s26  ;;  %p913_p8 = scmp.lt.s32.totalorder %s1246_s23, %s1302_s5 }
  0xcc   : > { %p914_p9 = scmp.lt.s32.totalorder %s912_s15, %s908_s26 }
  0xcd   : > { %p910_p6 = pnand %p909_p5, %p1062_p0 }
  0xce   : > { %p915_p10 = por %p914_p9, %p913_p8 }
  0xcf   : > { %p911_p7 = pneg %p910_p6 }
  0xd1   : > { %p916_p11 = pnand %p915_p10, %p911_p7 }
  0xd3   : > { %919 = shalt.err (!%p916_p11)
}
  0xd4   : > { %779 = dma.vmem_to_hbm [thread:$0]  (%p1062_p0), %s1248_s21, 1024, %s1246_s23, %s507_s17, %s983_s12, %s983_s12, %s984_s19  }
  0xd5 PF: > { %p789_p12 = scmp.ge.s32.totalorder %s976_s6, 2  ;;  %s557_s3 = sand.u32 1, %s956_s1  }
  0xd6   : > { %s558_s10 = scalar_lea.sflag [#allocation6], %s557_s3 }
  0xd7   : > { %p783_p13 = pnand %p789_p12, %p1069_p4 }
  0xd9   : > { %p784_p1 = pneg %p783_p13 }
  0xdb   : > { %947 = dma.done.wait (%p784_p1), %s558_s10, 1024  }
  0xdc   : > { %949 = vsyncadd (%p784_p1), %s558_s10, 4294966272  ;;  %s567_s24 = scalar_lea.sflag [#allocation8], %s557_s3 }
  0xdd   : > { %951 = dma.done.wait (%p784_p1), %s567_s24, 1024  }
  0xde   : > { %953 = vsyncadd (%p784_p1), %s567_s24, 4294966272  ;;  %s32_s6 = sadd.s32 1, %s976_s6   ;;  %s1312_s1 = smov %s960_s27 }
  0xdf   : > { %p29_p2 = scmp.ge.s32.totalorder %s32_s6, 4   ;;  %s1313_s27 = smov %s964_s28 }
  0xe0   : > { %s1314_s28 = smov %s1075_s14  ;;  %s1315_s29 = smov %s972_s30 }
  0xe1   : > { %s1316_s30 = smov %s1318_s9  ;;  %31 = sbr.rel (!%p29_p2) target bundleno = 32 (0x20), region = 113 }
  0xe6   :  { %572 = vsyncpa [#allocation6], 1 }
  0xe7   :  { %574 = vsyncpa [#allocation6 + $0x1], 1 }
  0xe8   :  { %575 = vsyncpa [#allocation8], 1 }
  0xe9   :  { %577 = vsyncpa [#allocation8 + $0x1], 1 }

</bundles_post_ra>
